<compile_context>
chip_gen: v5e
topology: v5e:2x2
jax: 0.10.0
libtpu: 0.0.40
codegen_flags: <defaults>
</compile_context>

<pallas_src>
import functools
import math

import jax
import jax.numpy as jnp
from jax.experimental import pallas as pl
from jax.experimental.pallas import tpu as pltpu

LANE = 128
SUBLANE = 8
H1 = 120
H2 = 84


def _round_up(x, m):
    return ((x + m - 1) // m) * m


def _qnet_kernel(x_ref, w1_ref, b1_ref, w2_ref, b2_ref, w3_ref, b3_ref, o_ref):
    # MXU operands in the weights' dtype (bf16 recommended), f32 accumulation;
    # bias add + ReLU stay in f32 on the VPU.
    cdt = w1_ref.dtype
    x = x_ref[...].astype(cdt)
    h1 = jnp.dot(x, w1_ref[...], preferred_element_type=jnp.float32) + b1_ref[...]
    h1 = jnp.maximum(h1, 0.0)
    h2 = jnp.dot(h1.astype(cdt), w2_ref[...], preferred_element_type=jnp.float32) + b2_ref[...]
    h2 = jnp.maximum(h2, 0.0)
    out = jnp.dot(h2.astype(cdt), w3_ref[...], preferred_element_type=jnp.float32) + b3_ref[...]
    # Store only the real action columns (output block is (bt, num_action)).
    na = o_ref.shape[-1]
    o_ref[...] = out[:, :na].astype(o_ref.dtype)


@functools.partial(jax.jit, static_argnames=("num_action", "batch_tile"))
def qnetwork_forward(x, padded_params, *, num_action, batch_tile=1024):
    """Fused MLP forward.

    x: (B, num_obs) float array.
    padded_params: output of prepare_params_for_tpu (lane-padded, transposed weights).
    num_action: true (unpadded) number of actions; output is (B, num_action).
    """
    w1, b1 = padded_params["w1"], padded_params["b1"]
    w2, b2 = padded_params["w2"], padded_params["b2"]
    w3, b3 = padded_params["w3"], padded_params["b3"]

    B, num_obs = x.shape

    # Large sublane-aligned batch tile, clamped to the (rounded-up) batch so tiny
    # batches never allocate oversized blocks.
    bt = min(_round_up(batch_tile, SUBLANE), _round_up(B, SUBLANE))
    # Ensure >= 2 "parallel" grid steps for non-trivial batches so both v7x
    # TensorCores get work (one extra ~0.35us step on 1-TC gens is negligible).
    if B > SUBLANE:
        bt = min(bt, _round_up(pl.cdiv(B, 2), SUBLANE))
    bt = max(SUBLANE, bt)
    grid = (pl.cdiv(B, bt),)

    # Weights/biases: one full-extent block each, resident across all batch
    # tiles (constant index_map => no per-step re-DMA).
    def full(a):
        return pl.BlockSpec(a.shape, lambda i: (0,) * a.ndim)

    weight_bytes = sum(int(a.size) * a.dtype.itemsize for a in (w1, b1, w2, b2, w3, b3))
    flops = 2 * B * (w1.shape[0] * w1.shape[1]
                     + w2.shape[0] * w2.shape[1]
                     + w3.shape[0] * w3.shape[1])
    bytes_accessed = (int(x.size) * x.dtype.itemsize          # streamed input
                      + B * num_action * 4                    # f32 output
                      + weight_bytes)                         # resident params

    out = pl.pallas_call(
        _qnet_kernel,
        out_shape=jax.ShapeDtypeStruct((B, num_action), jnp.float32),
        grid_spec=pltpu.PrefetchScalarGridSpec(
            num_scalar_prefetch=0,
            grid=grid,
            in_specs=[
                pl.BlockSpec((bt, num_obs), lambda i: (i, 0)),  # streamed x tile
                full(w1), full(b1),
                full(w2), full(b2),
                full(w3), full(b3),
            ],
            # Output block covers the full (unpadded) action dim: last block dim
            # equals the full array dim, so no 128-lane padding / HBM round trip.
            out_specs=pl.BlockSpec((bt, num_action), lambda i: (i, 0)),
        ),
        compiler_params=pltpu.CompilerParams(
            dimension_semantics=("parallel",),
        ),
        cost_estimate=pl.CostEstimate(
            flops=flops,
            transcendentals=0,
            bytes_accessed=bytes_accessed,
        ),
    )(x, w1, b1, w2, b2, w3, b3)

    return out


def init_qnetwork_params(key, num_obs, num_action):
    """PyTorch-equivalent nn.Linear init; weights stored transposed as (in, out)."""
    dims = [(num_obs, H1), (H1, H2), (H2, num_action)]
    params = {}
    for idx, (fan_in, fan_out) in enumerate(dims, start=1):
        key, kw, kb = jax.random.split(key, 3)
        bound = 1.0 / math.sqrt(fan_in)
        params[f"w{idx}"] = jax.random.uniform(
            kw, (fan_in, fan_out), jnp.float32, -bound, bound)
        params[f"b{idx}"] = jax.random.uniform(
            kb, (1, fan_out), jnp.float32, -bound, bound)
    return params


def prepare_params_for_tpu(params, compute_dtype=jnp.bfloat16):
    """Zero-pad hidden/output dims to 128 lanes and cast weights to the MXU
    compute dtype (biases stay f32). Call once, outside the hot path.

    Layer-1 contraction dim stays at the true num_obs (x is streamed unpadded);
    padding num_obs would multiply input DMA traffic for zero benefit."""
    prepared = {}
    for idx in (1, 2, 3):
        w = params[f"w{idx}"]
        b = params[f"b{idx}"]
        fan_in, fan_out = w.shape
        in_p = fan_in if idx == 1 else _round_up(fan_in, LANE)
        out_p = _round_up(fan_out, LANE)
        w_p = jnp.zeros((in_p, out_p), compute_dtype)
        w_p = w_p.at[:fan_in, :fan_out].set(w.astype(compute_dtype))
        b_p = jnp.zeros((1, out_p), jnp.float32)
        b_p = b_p.at[:, :fan_out].set(b.astype(jnp.float32))
        prepared[f"w{idx}"] = w_p
        prepared[f"b{idx}"] = b_p
    return prepared


def _reference_forward(x, params):
    h1 = jnp.maximum(x @ params["w1"] + params["b1"], 0.0)
    h2 = jnp.maximum(h1 @ params["w2"] + params["b2"], 0.0)
    return h2 @ params["w3"] + params["b3"]


if __name__ == "__main__":
    num_obs = 8      # small observation vector
    num_action = 4   # small discrete action space
    batch = 2

    key = jax.random.PRNGKey(0)
    key, kx = jax.random.split(key)
    x = jax.random.normal(kx, (batch, num_obs), jnp.float32)

    params = init_qnetwork_params(key, num_obs, num_action)
    ref = _reference_forward(x, params)

    # Exact-precision path (f32 MXU inputs) — matches the PyTorch module numerics.
    p_f32 = prepare_params_for_tpu(params, compute_dtype=jnp.float32)
    out_f32 = jax.block_until_ready(qnetwork_forward(x, p_f32, num_action=num_action))
    assert out_f32.shape == (batch, num_action)
    assert jnp.allclose(out_f32, ref, atol=1e-4, rtol=1e-4), "f32 mismatch vs reference"

    # Fast path (bf16 MXU inputs, f32 accumulation) — looser tolerance.
    p_bf16 = prepare_params_for_tpu(params, compute_dtype=jnp.bfloat16)
    out_bf16 = jax.block_until_ready(qnetwork_forward(x, p_bf16, num_action=num_action))
    assert out_bf16.shape == (batch, num_action)
    assert jnp.allclose(out_bf16, ref, atol=5e-2, rtol=5e-2), "bf16 mismatch vs reference"

    # A larger batch exercising multiple grid steps (partial last block + 2-way split).
    key, kx2 = jax.random.split(key)
    x_big = jax.random.normal(kx2, (300, num_obs), jnp.float32)
    ref_big = _reference_forward(x_big, params)
    out_big = jax.block_until_ready(qnetwork_forward(x_big, p_f32, num_action=num_action))
    assert out_big.shape == (300, num_action)
    assert jnp.allclose(out_big, ref_big, atol=1e-4, rtol=1e-4), "f32 big-batch mismatch"

    print("KERNEL_OK")
</pallas_src>

<mosaic_0001>
module attributes {stable_mosaic.version = 11 : i64} {
  func.func @_qnet_kernel(%arg0: i32, %arg1: memref<8x8xf32, #tpu.memory_space<vmem>>, %arg2: memref<8x128xf32, #tpu.memory_space<vmem>>, %arg3: memref<1x128xf32, #tpu.memory_space<vmem>>, %arg4: memref<128x128xf32, #tpu.memory_space<vmem>>, %arg5: memref<1x128xf32, #tpu.memory_space<vmem>>, %arg6: memref<128x128xf32, #tpu.memory_space<vmem>>, %arg7: memref<1x128xf32, #tpu.memory_space<vmem>>, %arg8: memref<8x4xf32, #tpu.memory_space<vmem>>) attributes {dimension_semantics = [#tpu.dimension_semantics<parallel>], iteration_bounds = array<i64: 1>, scalar_prefetch = 0 : i64, scratch_operands = 0 : i64, tpu.core_type = #tpu.core_type<tc>, window_params = [{transform_indices = @transform_0, window_bounds = array<i64: 8, 8>}, {pipeline_mode = #tpu.pipeline_mode<synchronous>, transform_indices = @transform_1, window_bounds = array<i64: 8, 128>}, {pipeline_mode = #tpu.pipeline_mode<synchronous>, transform_indices = @transform_2, window_bounds = array<i64: 1, 128>}, {pipeline_mode = #tpu.pipeline_mode<synchronous>, transform_indices = @transform_3, window_bounds = array<i64: 128, 128>}, {pipeline_mode = #tpu.pipeline_mode<synchronous>, transform_indices = @transform_4, window_bounds = array<i64: 1, 128>}, {pipeline_mode = #tpu.pipeline_mode<synchronous>, transform_indices = @transform_5, window_bounds = array<i64: 128, 128>}, {pipeline_mode = #tpu.pipeline_mode<synchronous>, transform_indices = @transform_6, window_bounds = array<i64: 1, 128>}, {transform_indices = @transform_7, window_bounds = array<i64: 8, 4>}]} {
    %c0 = arith.constant 0 : index
    %c0_0 = arith.constant 0 : index
    %0 = vector.load %arg1[%c0, %c0_0] : memref<8x8xf32, #tpu.memory_space<vmem>>, vector<8x8xf32>
    %c0_1 = arith.constant 0 : index
    %c0_2 = arith.constant 0 : index
    %1 = vector.load %arg2[%c0_1, %c0_2] : memref<8x128xf32, #tpu.memory_space<vmem>>, vector<8x128xf32>
    %cst = arith.constant dense<0.000000e+00> : vector<8x128xf32>
    %2 = tpu.matmul %0, %1, %cst {dimension_numbers = #tpu.dot_dimension_numbers<[1], [0], [0], [1], [0, 0, 1, 1], [], []>} : vector<8x8xf32>, vector<8x128xf32>, vector<8x128xf32> -> vector<8x128xf32>
    %c0_3 = arith.constant 0 : index
    %c0_4 = arith.constant 0 : index
    %3 = vector.load %arg3[%c0_3, %c0_4] : memref<1x128xf32, #tpu.memory_space<vmem>>, vector<1x128xf32>
    %4 = vector.broadcast %3 : vector<1x128xf32> to vector<8x128xf32>
    %5 = arith.addf %2, %4 : vector<8x128xf32>
    %cst_5 = arith.constant 0.000000e+00 : f32
    %6 = vector.broadcast %cst_5 : f32 to vector<8x128xf32>
    %7 = arith.maximumf %5, %6 : vector<8x128xf32>
    %c0_6 = arith.constant 0 : index
    %c0_7 = arith.constant 0 : index
    %8 = vector.load %arg4[%c0_6, %c0_7] : memref<128x128xf32, #tpu.memory_space<vmem>>, vector<128x128xf32>
    %cst_8 = arith.constant dense<0.000000e+00> : vector<8x128xf32>
    %9 = tpu.matmul %7, %8, %cst_8 {dimension_numbers = #tpu.dot_dimension_numbers<[1], [0], [0], [1], [0, 0, 1, 1], [], []>} : vector<8x128xf32>, vector<128x128xf32>, vector<8x128xf32> -> vector<8x128xf32>
    %c0_9 = arith.constant 0 : index
    %c0_10 = arith.constant 0 : index
    %10 = vector.load %arg5[%c0_9, %c0_10] : memref<1x128xf32, #tpu.memory_space<vmem>>, vector<1x128xf32>
    %11 = vector.broadcast %10 : vector<1x128xf32> to vector<8x128xf32>
    %12 = arith.addf %9, %11 : vector<8x128xf32>
    %cst_11 = arith.constant 0.000000e+00 : f32
    %13 = vector.broadcast %cst_11 : f32 to vector<8x128xf32>
    %14 = arith.maximumf %12, %13 : vector<8x128xf32>
    %c0_12 = arith.constant 0 : index
    %c0_13 = arith.constant 0 : index
    %15 = vector.load %arg6[%c0_12, %c0_13] : memref<128x128xf32, #tpu.memory_space<vmem>>, vector<128x128xf32>
    %cst_14 = arith.constant dense<0.000000e+00> : vector<8x128xf32>
    %16 = tpu.matmul %14, %15, %cst_14 {dimension_numbers = #tpu.dot_dimension_numbers<[1], [0], [0], [1], [0, 0, 1, 1], [], []>} : vector<8x128xf32>, vector<128x128xf32>, vector<8x128xf32> -> vector<8x128xf32>
    %c0_15 = arith.constant 0 : index
    %c0_16 = arith.constant 0 : index
    %17 = vector.load %arg7[%c0_15, %c0_16] : memref<1x128xf32, #tpu.memory_space<vmem>>, vector<1x128xf32>
    %18 = vector.broadcast %17 : vector<1x128xf32> to vector<8x128xf32>
    %19 = arith.addf %16, %18 : vector<8x128xf32>
    %20 = vector.extract_strided_slice %19 {offsets = [0, 0], sizes = [8, 4], strides = [1, 1]} : vector<8x128xf32> to vector<8x4xf32>
    %c0_17 = arith.constant 0 : index
    %c0_18 = arith.constant 0 : index
    %21 = vector.load %arg8[%c0_17, %c0_18] : memref<8x4xf32, #tpu.memory_space<vmem>>, vector<8x4xf32>
    tpu.vector_store %arg8[%c0_17, %c0_18], %20 {strides = array<i32>} : memref<8x4xf32, #tpu.memory_space<vmem>>, vector<8x4xf32>,
    return
  }
  func.func @transform_0(%arg0: i32) -> (i32, i32) {
    %c0_i32 = arith.constant 0 : i32
    %c0_i32_0 = arith.constant 0 : i32
    return %arg0, %c0_i32 : i32, i32
  }
  func.func @transform_1(%arg0: i32) -> (i32, i32) {
    %c0_i32 = arith.constant 0 : i32
    %c0_i32_0 = arith.constant 0 : i32
    %c0_i32_1 = arith.constant 0 : i32
    return %c0_i32, %c0_i32_0 : i32, i32
  }
  func.func @transform_2(%arg0: i32) -> (i32, i32) {
    %c0_i32 = arith.constant 0 : i32
    %c0_i32_0 = arith.constant 0 : i32
    %c0_i32_1 = arith.constant 0 : i32
    return %c0_i32, %c0_i32_0 : i32, i32
  }
  func.func @transform_3(%arg0: i32) -> (i32, i32) {
    %c0_i32 = arith.constant 0 : i32
    %c0_i32_0 = arith.constant 0 : i32
    %c0_i32_1 = arith.constant 0 : i32
    return %c0_i32, %c0_i32_0 : i32, i32
  }
  func.func @transform_4(%arg0: i32) -> (i32, i32) {
    %c0_i32 = arith.constant 0 : i32
    %c0_i32_0 = arith.constant 0 : i32
    %c0_i32_1 = arith.constant 0 : i32
    return %c0_i32, %c0_i32_0 : i32, i32
  }
  func.func @transform_5(%arg0: i32) -> (i32, i32) {
    %c0_i32 = arith.constant 0 : i32
    %c0_i32_0 = arith.constant 0 : i32
    %c0_i32_1 = arith.constant 0 : i32
    return %c0_i32, %c0_i32_0 : i32, i32
  }
  func.func @transform_6(%arg0: i32) -> (i32, i32) {
    %c0_i32 = arith.constant 0 : i32
    %c0_i32_0 = arith.constant 0 : i32
    %c0_i32_1 = arith.constant 0 : i32
    return %c0_i32, %c0_i32_0 : i32, i32
  }
  func.func @transform_7(%arg0: i32) -> (i32, i32) {
    %c0_i32 = arith.constant 0 : i32
    %c0_i32_0 = arith.constant 0 : i32
    return %arg0, %c0_i32 : i32, i32
  }
}

</mosaic_0001>

<bundles_post_ra>
// kernel: qnetwork_forward.1
= control target key start
LH: loop header
LB: loop body
LE: loop exit
PB: predicated region body
PF: predicated region fallthrough
CT: control target
= control target key end

     0   :  { %12 = vsyncpa [#allocation3], 0  ;;  %s482_s0 = inlined_call_operand.hbm [shape: f32[2,8], index: 0, kind: input, shape index: {}]   ;;  %s483_s1 = inlined_call_operand.hbm [shape: f32[8,128], index: 1, kind: input, shape index: {}]   ;;  %s484_s2 = inlined_call_operand.hbm [shape: f32[1,128], index: 2, kind: input, shape index: {}]   ;;  %s485_s3 = inlined_call_operand.hbm [shape: f32[128,128], index: 3, kind: input, shape index: {}]   ;;  %s486_s4 = inlined_call_operand.vmem [shape: f32[1,128], index: 4, kind: input, shape index: {}]   ;;  %s487_s5 = inlined_call_operand.hbm [shape: f32[128,128], index: 5, kind: input, shape index: {}]   ;;  %s488_s6 = inlined_call_operand.vmem [shape: f32[1,128], index: 6, kind: input, shape index: {}]   ;;  %s489_s7 = inlined_call_operand.hbm [shape: f32[2,4], index: 7, kind: output, shape index: {}]  }
   0x1   :  { %13 = vsyncpa [#allocation6], 0 }
   0x2   :  { %14 = vsyncpa [#allocation9], 0 }
   0x3   :  { %15 = vsyncpa [#allocation4], 0  ;;  %s34_s26 = sshll.u32 %s483_s1, 4  ;;  %s35_s26 = int_to_ptr.hbm [resolvable:$true] %s34_s26 }
   0x4   :  { %19 = vsyncadd [#allocation3], 96  ;;  %s402_s27 = smov [#allocation5]   ;;  %s55_s8 = sshll.u32 %s485_s3, 4  ;;  %s56_s8 = int_to_ptr.hbm [resolvable:$true] %s55_s8 }
   0x5   :  { %s36_s28 = sshll.u32 %s402_s27, 4  ;;  %s403_s9 = smov [#allocation8]   ;;  %s37_s28 = int_to_ptr.vmem [resolvable:$true] %s36_s28 }
   0x6   :  { %39 = dma.hbm_to_vmem [thread:$0]  %s35_s26, 128, %s37_s28, [#allocation6]  }
   0x7   :  { %s57_s10 = sshll.u32 %s403_s9, 4  ;;  %s404_s11 = smov 128   ;;  %s58_s10 = int_to_ptr.vmem [resolvable:$true] %s57_s10 }
   0x8   :  { %s405_s12 = smov 8   ;;  %s20_s1 = sshll.u32 %s482_s0, 4  ;;  %s21_s1 = int_to_ptr.hbm [resolvable:$true] %s20_s1 }
   0x9   :  { %63 = dma.hbm_to_vmem [thread:$0]  %s56_s8, 2048, %s58_s10, [#allocation9], %s404_s11, %s404_s11, %s405_s12  }
   0xa   :  { %s406_s15 = smov [#allocation2]   ;;  %s45_s3 = sshll.u32 %s484_s2, 4  ;;  %s46_s3 = int_to_ptr.hbm [resolvable:$true] %s45_s3 }
   0xb   :  { %s22_s16 = sshll.u32 %s406_s15, 4  ;;  %s407_s19 = smov 32   ;;  %s23_s16 = int_to_ptr.vmem [resolvable:$true] %s22_s16 }
   0xc   :  { %s408_s20 = smov 2   ;;  %s409_s21 = smov [#allocation7]  }
   0xd   :  { %28 = dma.hbm_to_vmem [thread:$0]  %s21_s1, 32, %s23_s16, [#allocation3], %s407_s19, %s407_s19, %s408_s20  }
   0xe   :  { %s47_s22 = sshll.u32 %s409_s21, 4  ;;  %s70_s0 = sshll.u32 %s487_s5, 4  ;;  %s48_s22 = int_to_ptr.vmem [resolvable:$true] %s47_s22  ;;  %s71_s0 = int_to_ptr.hbm [resolvable:$true] %s70_s0 }
   0xf   :  { %50 = dma.hbm_to_vmem [thread:$0]  %s46_s3, 16, %s48_s22, [#allocation6]  }
  0x10   :  { %s410_s25 = smov [#allocation10]  }
  0x11   :  { %s72_s26 = sshll.u32 %s410_s25, 4  ;;  %s73_s26 = int_to_ptr.vmem [resolvable:$true] %s72_s26 }
  0x12   :  { %78 = dma.hbm_to_vmem [thread:$0]  %s71_s0, 2048, %s73_s26, [#allocation9], %s404_s11, %s404_s11, %s405_s12  }
  0x13   :  { %394 = dma.done.wait [#allocation3], 128  }
  0x14   :  { %395 = vsyncadd [#allocation3], 4294967168 }
  0x15   :  { %396 = dma.done.wait [#allocation6], 144  }
  0x16   :  { %397 = vsyncadd [#allocation6], 4294967152 }
  0x17   :  { %398 = dma.done.wait [#allocation9], 4096  }
  0x18   :  { %399 = vsyncadd [#allocation9], 4294963200  ;;  %vm107_vm0 = vcmask 64512   ;;  %v102_v0 = vld [vmem:[#allocation5] sm:$0xff]  ;;  %v101_v1 = vld [vmem:[#allocation2] sm:$0xff]  ;;  %vm213_vm1 = vcmask 31744  }
  0x19   :  { %v147_v2 = vld [vmem:[#allocation8 + $0x78] sm:$0xff]  ;;  %126 = vmatpush.msra.mxu0 %v102_v0  ;;  %v146_v3 = vld [vmem:[#allocation8 + $0x70] sm:$0xff]  ;;  %v145_v4 = vld [vmem:[#allocation8 + $0x68] sm:$0xff] }
  0x1a   :  { %152 = vmatpush.msra.mxu1 %v147_v2  ;;  %236 = vmatmul.msk.f32.vlgmr.msra.gmra.mxu0 %vm107_vm0, %v101_v1  ;;  %v144_v5 = vld [vmem:[#allocation8 + $0x60] sm:$0xff]  ;;  %v143_v6 = vld [vmem:[#allocation8 + $0x58] sm:$0xff]  ;;  %v142_v7 = vld [vmem:[#allocation8 + $0x50] sm:$0xff] }
  0x1b   :  { %v141_v8 = vld [vmem:[#allocation8 + $0x48] sm:$0xff]  ;;  %v140_v9 = vld [vmem:[#allocation8 + $0x40] sm:$0xff]  ;;  %v139_v10 = vld [vmem:[#allocation8 + $0x38] sm:$0xff] }
  0x1c   :  { %153 = vmatpush.msra.mxu1 %v146_v3  ;;  %v138_v11 = vld [vmem:[#allocation8 + $0x30] sm:$0xff]  ;;  %v137_v12 = vld [vmem:[#allocation8 + $0x28] sm:$0xff]  ;;  %v136_v13 = vld [vmem:[#allocation8 + $0x20] sm:$0xff] }
  0x1d   :  { %v135_v14 = vld [vmem:[#allocation8 + $0x18] sm:$0xff]  ;;  %v134_v15 = vld [vmem:[#allocation8 + $0x10] sm:$0xff]  ;;  %v133_v16 = vld [vmem:[#allocation8 + $0x8] sm:$0xff] }
  0x1e   :  { %154 = vmatpush.msra.mxu1 %v145_v4  ;;  %v132_v17 = vld [vmem:[#allocation8] sm:$0xff]  ;;  %v188_v18 = vld [vmem:[#allocation10 + $0x78] sm:$0xff]  ;;  %v187_v19 = vld [vmem:[#allocation10 + $0x70] sm:$0xff] }
  0x1f   :  { %193 = vmatpush.msra.mxu2 %v188_v18  ;;  %v186_v20 = vld [vmem:[#allocation10 + $0x68] sm:$0xff]  ;;  %v185_v21 = vld [vmem:[#allocation10 + $0x60] sm:$0xff]  ;;  %v184_v22 = vld [vmem:[#allocation10 + $0x58] sm:$0xff] }
  0x20   :  { %155 = vmatpush.msra.mxu1 %v144_v5  ;;  %v183_v23 = vld [vmem:[#allocation10 + $0x50] sm:$0xff]  ;;  %v182_v24 = vld [vmem:[#allocation10 + $0x48] sm:$0xff]  ;;  %v181_v25 = vld [vmem:[#allocation10 + $0x40] sm:$0xff] }
  0x21   :  { %194 = vmatpush.msra.mxu2 %v187_v19  ;;  %v180_v26 = vld [vmem:[#allocation10 + $0x38] sm:$0xff]  ;;  %v179_v27 = vld [vmem:[#allocation10 + $0x30] sm:$0xff]  ;;  %v178_v28 = vld [vmem:[#allocation10 + $0x28] sm:$0xff] }
  0x22   :  { %156 = vmatpush.msra.mxu1 %v143_v6  ;;  %v177_v29 = vld [vmem:[#allocation10 + $0x20] sm:$0xff]  ;;  %v176_v30 = vld [vmem:[#allocation10 + $0x18] sm:$0xff]  ;;  %v175_v35 = vld [vmem:[#allocation10 + $0x10] sm:$0xff] }
  0x23   :  { %195 = vmatpush.msra.mxu2 %v186_v20  ;;  %v247_v31 = vld [vmem:[#allocation7] ss:$0 sm:$0xff]  ;;  %v174_v36 = vld [vmem:[#allocation10 + $0x8] sm:$0xff]  ;;  %v173_v37 = vld [vmem:[#allocation10] sm:$0xff] }
  0x24   :  { %157 = vmatpush.msra.mxu1 %v142_v7  ;;  %v248_v38 = vld [vmem:[%s486_s4] ss:$0 sm:$0xff] }
  0x25   :  { %196 = vmatpush.msra.mxu2 %v185_v21  ;;  %v249_v42 = vld [vmem:[%s488_s6] ss:$0 sm:$0xff] }
  0x26   :  { %158 = vmatpush.msra.mxu1 %v141_v8 }
  0x27   :  { %197 = vmatpush.msra.mxu2 %v184_v22 }
  0x28   :  { %159 = vmatpush.msra.mxu1 %v140_v9 }
  0x29   :  { %198 = vmatpush.msra.mxu2 %v183_v23 }
  0x2a   :  { %160 = vmatpush.msra.mxu1 %v139_v10 }
  0x2b   :  { %199 = vmatpush.msra.mxu2 %v182_v24 }
  0x2c   :  { %161 = vmatpush.msra.mxu1 %v138_v11 }
  0x2d   :  { %200 = vmatpush.msra.mxu2 %v181_v25 }
  0x2e   :  { %162 = vmatpush.msra.mxu1 %v137_v12 }
  0x2f   :  { %201 = vmatpush.msra.mxu2 %v180_v26 }
  0x30   :  { %163 = vmatpush.msra.mxu1 %v136_v13 }
  0x31   :  { %202 = vmatpush.msra.mxu2 %v179_v27 }
  0x32   :  { %164 = vmatpush.msra.mxu1 %v135_v14 }
  0x33   :  { %203 = vmatpush.msra.mxu2 %v178_v28 }
  0x34   :  { %165 = vmatpush.msra.mxu1 %v134_v15 }
  0x35   :  { %204 = vmatpush.msra.mxu2 %v177_v29 }
  0x36   :  { %166 = vmatpush.msra.mxu1 %v133_v16 }
  0x37   :  { %205 = vmatpush.msra.mxu2 %v176_v30 }
  0x38   :  { %167 = vmatpush.msra.mxu1 %v132_v17 }
  0x39   :  { %206 = vmatpush.msra.mxu2 %v175_v35 }
  0x3b   :  { %207 = vmatpush.msra.mxu2 %v174_v36 }
  0x3d   :  { %208 = vmatpush.msra.mxu2 %v173_v37 }
  0x97   :  { %v128_v32 = vpop.f32.mrf.mxu0 }
  0x98   :  { %v129_v33 = vadd.f32 %v247_v31, %v128_v32 }
  0x9a   :  { %v131_v34 = vmax.f32 %v129_v33, 0.0 }
  0x9c   :  { %168 = vmatmul.f32.vlgmr.msra.gmra.mxu1 %v131_v34 }
 0x119   :  { %v169_v39 = vpop.f32.mrf.mxu1 }
 0x11a   :  { %v170_v40 = vadd.f32 %v248_v38, %v169_v39 }
 0x11c   :  { %v172_v41 = vmax.f32 %v170_v40, 0.0 }
 0x11e   :  { %209 = vmatmul.f32.vlgmr.msra.gmra.mxu2 %v172_v41 }
 0x1a1   :  { %v210_v43 = vpop.f32.mrf.mxu2 }
 0x1a2   :  { %v211_v44 = vadd.f32 %v249_v42, %v210_v43 }
 0x1a4   :  { %214 = vst.msk [vmem:[#allocation11] sm:$0xff] %vm213_vm1, %v211_v44 }
 0x1a5   :  { %218 = vsyncadd [#allocation4], 96  ;;  %s221_s8 = sshll.u32 %s489_s7, 4  ;;  %s411_s9 = smov [#allocation11]   ;;  %s222_s8 = int_to_ptr.hbm [resolvable:$true] %s221_s8 }
 0x1a6   :  { %s219_s10 = sshll.u32 %s411_s9, 4  ;;  %s220_s10 = int_to_ptr.vmem [resolvable:$true] %s219_s10 }
 0x1a7   :  { %227 = dma.vmem_to_hbm [thread:$0]  %s220_s10, 32, %s222_s8, [#allocation4], %s407_s19, %s407_s19, %s408_s20  }
 0x1a8   :  { %400 = dma.done.wait [#allocation4], 128  }
 0x1a9   :  { %401 = vsyncadd [#allocation4], 4294967168 }
 0x1aa   :  { %232 = vsyncpa [#allocation3], 1 }
 0x1ab   :  { %233 = vsyncpa [#allocation6], 1 }
 0x1ac   :  { %234 = vsyncpa [#allocation9], 1 }
 0x1ad   :  { %235 = vsyncpa [#allocation4], 1 }

</bundles_post_ra>
